<compile_context>
chip_gen: v6e
topology: v6e:2x2x1
jax: 0.10.0
libtpu: 0.0.40
codegen_flags: <defaults>
</compile_context>

<pallas_src>
import jax
import jax.numpy as jnp
from jax.experimental import pallas as pl
from jax.experimental.pallas import tpu as pltpu


def _constant_input_kernel(const_ref, out_ref):
    # const_ref : (1, F)  resident learned-constant row (VMEM)
    # out_ref   : (TB, F) batch-tile of the flattened output
    out_ref[...] = jnp.broadcast_to(const_ref[...], out_ref.shape)


def constant_input_forward(x, const_param):
    """Replicates const_param (1, C, H, W) across the batch dim of x."""
    batch = x.shape[0]
    _, c, h, w = const_param.shape
    f = c * h * w
    dtype = const_param.dtype
    dtype_bytes = jnp.dtype(dtype).itemsize

    # Sublane alignment multiple per dtype width (f32:8, bf16:16, int8/fp8:32).
    sublane_mult = {4: 8, 2: 16, 1: 32}.get(dtype_bytes, 8)

    # Cap one output block at ~8 MiB; x2 double-buffered = 16 MiB, which fits the
    # default scoped VMEM on v5e (16 MiB) and v6e/v7x (32 MiB) without raising
    # vmem_limit_bytes.
    max_block_bytes = 8 * 1024 * 1024
    cap_rows = (max_block_bytes // (f * dtype_bytes)) // sublane_mult * sublane_mult
    cap_rows = max(sublane_mult, cap_rows)

    if batch <= cap_rows:
        # Single block covering the whole (small) batch; block dim == full array
        # dim, so the (8,128) divisibility rule is satisfied trivially.
        tb = batch
    else:
        # Multiple grid steps (also lets v7x shard the writeback across 2 TCs).
        tb = cap_rows
    grid = (pl.cdiv(batch, tb),)

    const_flat = const_param.reshape(1, f)

    out_flat = pl.pallas_call(
        _constant_input_kernel,
        out_shape=jax.ShapeDtypeStruct((batch, f), dtype),
        grid_spec=pltpu.PrefetchScalarGridSpec(
            num_scalar_prefetch=0,
            grid=grid,
            # Constant row stays resident: same block every grid step.
            in_specs=[pl.BlockSpec((1, f), lambda i: (0, 0))],
            # Each grid step writes one large batch-tile of the output.
            out_specs=pl.BlockSpec((tb, f), lambda i: (i, 0)),
        ),
        compiler_params=pltpu.CompilerParams(
            dimension_semantics=("parallel",),
        ),
        cost_estimate=pl.CostEstimate(
            flops=0,
            transcendentals=0,
            bytes_accessed=(batch * f + f) * dtype_bytes,
        ),
    )(const_flat)

    return out_flat.reshape(batch, c, h, w)


if __name__ == "__main__":
    # Deterministic parameter init (mirrors torch.randn(1, channel, size, size)).
    channel, size = 8, 4
    key = jax.random.PRNGKey(0)
    k_param, k_x = jax.random.split(key)
    const_param = jax.random.normal(k_param, (1, channel, size, size), jnp.float32)

    # The forward only reads input.shape[0]; use a small latent-like input.
    batch = 2
    x = jax.random.normal(k_x, (batch, 32), jnp.float32)

    out = constant_input_forward(x, const_param)
    out = jax.block_until_ready(out)

    # Reference check: pure-JAX broadcast.
    ref = jnp.broadcast_to(const_param, (batch, channel, size, size))
    assert out.shape == (batch, channel, size, size)
    assert out.dtype == jnp.float32
    assert jnp.array_equal(out, ref)

    print("KERNEL_OK")
</pallas_src>

<mosaic_0001>
module attributes {stable_mosaic.version = 11 : i64} {
  func.func @_constant_input_kernel(%arg0: i32, %arg1: memref<1x128xf32, #tpu.memory_space<vmem>>, %arg2: memref<2x128xf32, #tpu.memory_space<vmem>>) attributes {dimension_semantics = [#tpu.dimension_semantics<parallel>], iteration_bounds = array<i64: 1>, scalar_prefetch = 0 : i64, scratch_operands = 0 : i64, tpu.core_type = #tpu.core_type<tc>, window_params = [{pipeline_mode = #tpu.pipeline_mode<synchronous>, transform_indices = @transform_0, window_bounds = array<i64: 1, 128>}, {transform_indices = @transform_1, window_bounds = array<i64: 2, 128>}]} {
    %c0 = arith.constant 0 : index
    %c0_0 = arith.constant 0 : index
    %0 = vector.load %arg1[%c0, %c0_0] : memref<1x128xf32, #tpu.memory_space<vmem>>, vector<1x128xf32>
    %1 = vector.shape_cast %0 : vector<1x128xf32> to vector<1x128xf32>
    %2 = vector.broadcast %1 : vector<1x128xf32> to vector<2x128xf32>
    %c0_1 = arith.constant 0 : index
    %c0_2 = arith.constant 0 : index
    %3 = vector.load %arg2[%c0_1, %c0_2] : memref<2x128xf32, #tpu.memory_space<vmem>>, vector<2x128xf32>
    tpu.vector_store %arg2[%c0_1, %c0_2], %2 {strides = array<i32>} : memref<2x128xf32, #tpu.memory_space<vmem>>, vector<2x128xf32>,
    return
  }
  func.func @transform_0(%arg0: i32) -> (i32, i32) {
    %c0_i32 = arith.constant 0 : i32
    %c0_i32_0 = arith.constant 0 : i32
    %c0_i32_1 = arith.constant 0 : i32
    return %c0_i32, %c0_i32_0 : i32, i32
  }
  func.func @transform_1(%arg0: i32) -> (i32, i32) {
    %c0_i32 = arith.constant 0 : i32
    %c0_i32_0 = arith.constant 0 : i32
    return %arg0, %c0_i32 : i32, i32
  }
}

</mosaic_0001>

<bundles_post_ra>
// kernel: tpu_custom_call.1
= control target key start
LH: loop header
LB: loop body
LE: loop exit
PB: predicated region body
PF: predicated region fallthrough
CT: control target
= control target key end

     0   :  { %6 = vsyncpa [#allocation3], 0  ;;  %s109_s0 = inlined_call_operand.hbm [shape: f32[1,128], index: 0, kind: input, shape index: {}]   ;;  %s110_s1 = inlined_call_operand.hbm [shape: f32[2,128], index: 1, kind: output, shape index: {}]  }
   0x1   :  { %7 = vsyncpa [#allocation4], 0  ;;  %s91_s6 = smov [#allocation2]  }
   0x2   :  { %s14_s7 = sshll.u32 %s91_s6, 4  ;;  %s15_s7 = int_to_ptr.vmem [resolvable:$true] %s14_s7 }
   0x3   :  { %s55_s8 = scalar_lea.vmem %s15_s7, 16  ;;  %s59_s9 = scalar_lea.vmem %s15_s7, 32 }
   0x4   :  { %p56_p0 = scmp.ne.s32.totalorder %s15_s7, %s55_s8  ;;  %p60_p1 = scmp.lt.s32.totalorder %s15_s7, %s15_s7 }
   0x5   :  { %p61_p2 = scmp.lt.s32.totalorder %s59_s9, %s55_s8 }
   0x7   :  { %p62_p3 = por %p61_p2, %p60_p1 }
   0x9   :  { %p63_p4 = pnand %p62_p3, %p56_p0 }
   0xb   :  { %66 = shalt.err (!%p63_p4)
}
   0xc   :  { %17 = dma.hbm_to_vmem [thread:$0]  %s109_s0, 16, %s15_s7, [#allocation3]  }
   0xd   :  { %87 = dma.done.wait [#allocation3], 16  }
   0xe   :  { %88 = vsyncadd [#allocation3], 4294967280  ;;  %s92_s12 = smov [#allocation5]   ;;  %v44_v0 = vld [vmem:[#allocation2] ss:$0 sm:$0xff] }
   0xf   :  { %s35_s13 = sshll.u32 %s92_s12, 4  ;;  %28 = vst [vmem:[#allocation5] sm:$0x3] %v44_v0  ;;  %s36_s13 = int_to_ptr.vmem [resolvable:$true] %s35_s13 }
  0x10   :  { %s67_s14 = scalar_lea.vmem %s36_s13, 32  ;;  %p72_p6 = scmp.lt.s32.totalorder %s36_s13, %s36_s13 }
  0x11   :  { %p68_p5 = scmp.ne.s32.totalorder %s36_s13, %s67_s14  ;;  %p73_p7 = scmp.lt.s32.totalorder %s67_s14, %s67_s14 }
  0x13   :  { %p74_p8 = por %p73_p7, %p72_p6 }
  0x15   :  { %p75_p9 = pnand %p74_p8, %p68_p5 }
  0x17   :  { %78 = shalt.err (!%p75_p9)
}
  0x18   :  { %38 = dma.vmem_to_hbm [thread:$0]  %s36_s13, 32, %s110_s1, [#allocation4]  }
  0x19   :  { %89 = dma.done.wait [#allocation4], 32  }
  0x1a   :  { %90 = vsyncadd [#allocation4], 4294967264 }
  0x1b   :  { %42 = vsyncpa [#allocation3], 1 }
  0x1c   :  { %43 = vsyncpa [#allocation4], 1 }

</bundles_post_ra>
